<compile_context>
chip_gen: v7x
topology: tpu7x:2x2x1
jax: 0.10.0
libtpu: 0.0.40
codegen_flags: <defaults>
</compile_context>

<pallas_src>
import jax
import jax.numpy as jnp
from jax import lax
from jax.experimental import pallas as pl
from jax.experimental.pallas import tpu as pltpu


def _round_up(x, m):
    return (x + m - 1) // m * m


def _cluster_encoding_kernel(lbl_ref, x_ref, pe_ref, out_ref):
    # lbl_ref: VMEM (TR, 1) int32   labels for this row tile
    # x_ref:   VMEM (TR, D)         input rows
    # pe_ref:  VMEM (M, D)          full embedding table (resident)
    # out_ref: VMEM (TR, D)
    tr = x_ref.shape[0]
    m = pe_ref.shape[0]

    lbl = lbl_ref[...]                                     # (TR, 1) int32
    col = lax.broadcasted_iota(jnp.int32, (tr, m), 1)      # (TR, M)
    # One-hot gather matrix in the compute dtype (bf16/f32 -> MXU fast path on
    # all generations; out-of-range labels give an all-zero row, i.e. out = x).
    oh = (lbl == col).astype(x_ref.dtype)                  # (TR, M)
    gathered = jnp.dot(oh, pe_ref[...],
                       preferred_element_type=jnp.float32)  # (TR, D) f32
    out_ref[...] = (x_ref[...] + gathered).astype(out_ref.dtype)


def learned_cluster_encoding(x, cluster_labels, pe_weight, *, row_tile=512):
    """x: (B, S, D) float, cluster_labels: (B, S-1) int, pe_weight: (M, D)."""
    B, S, D = x.shape
    M, D2 = pe_weight.shape
    assert D2 == D
    assert cluster_labels.shape == (B, S - 1)
    # int32 labels are fine as long as M < 2**31 (torch uses int64).

    # torch.cat((zeros(B,1), labels), dim=1): prepend a zero label per row.
    labels_full = jnp.pad(cluster_labels.astype(jnp.int32),
                          ((0, 0), (1, 0)))                # (B, S)

    # Flatten to a row-major (B*S, D) slab and tile rows coarsely.
    BS = B * S
    xf = x.reshape(BS, D)
    lf = labels_full.reshape(BS, 1)

    tr = min(row_tile, _round_up(BS, 8))                   # sublane-aligned tile
    bs_pad = _round_up(BS, tr)
    if bs_pad != BS:
        # Padded rows get label 0 and x = 0; they are sliced off afterwards.
        xf = jnp.pad(xf, ((0, bs_pad - BS), (0, 0)))
        lf = jnp.pad(lf, ((0, bs_pad - BS), (0, 0)))
    num_tiles = bs_pad // tr

    out = pl.pallas_call(
        _cluster_encoding_kernel,
        out_shape=jax.ShapeDtypeStruct((bs_pad, D), x.dtype),
        grid=(num_tiles,),
        in_specs=[
            pl.BlockSpec((tr, 1), lambda i: (i, 0)),       # labels for the tile
            pl.BlockSpec((tr, D), lambda i: (i, 0)),       # x rows
            pl.BlockSpec((M, D), lambda i: (0, 0)),        # embedding table
        ],
        out_specs=pl.BlockSpec((tr, D), lambda i: (i, 0)),
        compiler_params=pltpu.CompilerParams(
            dimension_semantics=("parallel",)),            # megacore on v7x
    )(lf, xf, pe_weight)

    return out[:BS].reshape(B, S, D)


if __name__ == "__main__":
    # Small deterministic setup consistent with the module.
    B, N, D = 2, 8, 32          # batch, num clusters, embedding dim
    S = N + 1                   # sequence length after prepending zero label
    M = 10                      # max_cluster_embeddings

    key = jax.random.PRNGKey(0)
    kx, kw, kl = jax.random.split(key, 3)

    x = jax.random.normal(kx, (B, S, D), dtype=jnp.float32)
    pe_weight = 0.02 * jax.random.normal(kw, (M, D), dtype=jnp.float32)
    cluster_labels = jax.random.randint(kl, (B, N), minval=0, maxval=M,
                                        dtype=jnp.int32)

    # Pure-JAX reference.
    labels_full = jnp.concatenate(
        [jnp.zeros((B, 1), jnp.int32), cluster_labels], axis=1)
    ref = x + pe_weight[labels_full]

    # Default (coarse) tiling: single tile here.
    out = jax.block_until_ready(
        learned_cluster_encoding(x, cluster_labels, pe_weight))
    assert jnp.allclose(out, ref, atol=1e-5), "mismatch vs reference"

    # Also exercise the multi-tile + row-padding path with a tiny row tile.
    out_small = jax.block_until_ready(
        learned_cluster_encoding(x, cluster_labels, pe_weight, row_tile=8))
    assert jnp.allclose(out_small, ref, atol=1e-5), "mismatch (multi-tile)"

    print("KERNEL_OK")
</pallas_src>

<mosaic_0001>
module attributes {stable_mosaic.version = 11 : i64} {
  func.func @_cluster_encoding_kernel(%arg0: i32, %arg1: memref<24x1xi32, #tpu.memory_space<vmem>>, %arg2: memref<24x32xf32, #tpu.memory_space<vmem>>, %arg3: memref<10x32xf32, #tpu.memory_space<vmem>>, %arg4: memref<24x32xf32, #tpu.memory_space<vmem>>) attributes {dimension_semantics = [#tpu.dimension_semantics<parallel>], iteration_bounds = array<i64: 1>, scalar_prefetch = 0 : i64, scratch_operands = 0 : i64, tpu.core_type = #tpu.core_type<tc>, window_params = [{transform_indices = @transform_0, window_bounds = array<i64: 24, 1>}, {transform_indices = @transform_1, window_bounds = array<i64: 24, 32>}, {pipeline_mode = #tpu.pipeline_mode<synchronous>, transform_indices = @transform_2, window_bounds = array<i64: 10, 32>}, {transform_indices = @transform_3, window_bounds = array<i64: 24, 32>}]} {
    %c0 = arith.constant 0 : index
    %c0_0 = arith.constant 0 : index
    %0 = vector.load %arg1[%c0, %c0_0] : memref<24x1xi32, #tpu.memory_space<vmem>>, vector<24x1xi32>
    %1 = tpu.iota {dimensions = array<i32: 1>} : vector<24x10xi32>
    %2 = vector.broadcast %0 : vector<24x1xi32> to vector<24x10xi32>
    %3 = arith.cmpi eq, %2, %1 : vector<24x10xi32>
    %4 = arith.extui %3 : vector<24x10xi1> to vector<24x10xi32>
    %5 = arith.sitofp %4 : vector<24x10xi32> to vector<24x10xf32>
    %c0_1 = arith.constant 0 : index
    %c0_2 = arith.constant 0 : index
    %6 = vector.load %arg3[%c0_1, %c0_2] : memref<10x32xf32, #tpu.memory_space<vmem>>, vector<10x32xf32>
    %cst = arith.constant dense<0.000000e+00> : vector<24x32xf32>
    %7 = tpu.matmul %5, %6, %cst {dimension_numbers = #tpu.dot_dimension_numbers<[1], [0], [0], [1], [0, 0, 1, 1], [], []>} : vector<24x10xf32>, vector<10x32xf32>, vector<24x32xf32> -> vector<24x32xf32>
    %c0_3 = arith.constant 0 : index
    %c0_4 = arith.constant 0 : index
    %8 = vector.load %arg2[%c0_3, %c0_4] : memref<24x32xf32, #tpu.memory_space<vmem>>, vector<24x32xf32>
    %9 = arith.addf %8, %7 : vector<24x32xf32>
    %c0_5 = arith.constant 0 : index
    %c0_6 = arith.constant 0 : index
    %10 = vector.load %arg4[%c0_5, %c0_6] : memref<24x32xf32, #tpu.memory_space<vmem>>, vector<24x32xf32>
    tpu.vector_store %arg4[%c0_5, %c0_6], %9 {strides = array<i32>} : memref<24x32xf32, #tpu.memory_space<vmem>>, vector<24x32xf32>,
    return
  }
  func.func @transform_0(%arg0: i32) -> (i32, i32) {
    %c0_i32 = arith.constant 0 : i32
    %c0_i32_0 = arith.constant 0 : i32
    return %arg0, %c0_i32 : i32, i32
  }
  func.func @transform_1(%arg0: i32) -> (i32, i32) {
    %c0_i32 = arith.constant 0 : i32
    %c0_i32_0 = arith.constant 0 : i32
    return %arg0, %c0_i32 : i32, i32
  }
  func.func @transform_2(%arg0: i32) -> (i32, i32) {
    %c0_i32 = arith.constant 0 : i32
    %c0_i32_0 = arith.constant 0 : i32
    %c0_i32_1 = arith.constant 0 : i32
    return %c0_i32, %c0_i32_0 : i32, i32
  }
  func.func @transform_3(%arg0: i32) -> (i32, i32) {
    %c0_i32 = arith.constant 0 : i32
    %c0_i32_0 = arith.constant 0 : i32
    return %arg0, %c0_i32 : i32, i32
  }
}

</mosaic_0001>

<bundles_post_ra>
// kernel: tpu_custom_call.1
= control target key start
LH: loop header
LB: loop body
LE: loop exit
PB: predicated region body
PF: predicated region fallthrough
CT: control target
= control target key end

     0   :  { %8 = vsyncpa [#allocation3], 0  ;;  %s348_s0 = inlined_call_operand.vmem [shape: s32[24,1], index: 0, kind: input, shape index: {}]   ;;  %s349_s1 = inlined_call_operand.vmem [shape: f32[24,32], index: 1, kind: input, shape index: {}]   ;;  %s350_s2 = inlined_call_operand.hbm [shape: f32[10,32], index: 2, kind: input, shape index: {}]   ;;  %s351_s3 = inlined_call_operand.hbm [shape: f32[24,32], index: 3, kind: output, shape index: {}]  }
   0x1   :  { %9 = vsyncpa [#allocation4], 0  ;;  %s265_s12 = smov [#allocation2]   ;;  %s217_s16 = scalar_lea.hbm %s350_s2, 256 }
   0x2   :  { %s19_s13 = sshll.u32 %s265_s12, 4  ;;  %p218_p0 = scmp.ne.s32.totalorder %s350_s2, %s217_s16  ;;  %s20_s13 = int_to_ptr.vmem [resolvable:$true] %s19_s13 }
   0x3   :  { %p221_p1 = scmp.lt.u32.totalorder %s217_s16, %s350_s2 }
   0x5   :  { %p223_p2 = pnand %p221_p1, %p218_p0 }
   0x7   :  { %226 = shalt.err (!%p223_p2)
}
   0x8   :  { %s227_s21 = scalar_lea.vmem %s20_s13, 256  ;;  %p232_p4 = scmp.lt.s32.totalorder %s20_s13, %s20_s13 }
   0x9   :  { %p228_p3 = scmp.ne.s32.totalorder %s20_s13, %s227_s21  ;;  %p233_p5 = scmp.lt.s32.totalorder %s227_s21, %s227_s21 }
   0xb   :  { %p234_p6 = por %p233_p5, %p232_p4 }
   0xd   :  { %p235_p7 = pnand %p234_p6, %p228_p3 }
   0xf   :  { %238 = shalt.err (!%p235_p7)
}
  0x10   :  { %s266_s22 = smov 128   ;;  %s267_s23 = smov 8  }
  0x11   :  { %25 = dma.hbm_to_vmem [thread:$0]  %s350_s2, 256, %s20_s13, [#allocation3], %s266_s22, %s266_s22, %s267_s23  }
  0x12   :  { %261 = dma.done.wait [#allocation3], 256  }
  0x13   :  { %262 = vsyncadd [#allocation3], 4294967040  ;;  %v268_v0 = vmov 0   ;;  %v269_v1 = vmov 0.0|0.0   ;;  %vm64_vm0 = vcmask 1041408   ;;  %v30_v2 = vld [vmem:[%s348_s0 + $0x8] sm:$0xff]  ;;  %v32_v9 = vlaneseq }
  0x14   :  { %215 = vset.pattern.permute.xlu0 %v268_v0  ;;  %216 = vset.pattern.permute.xlu1 %v268_v0  ;;  %v31_v3 = vld [vmem:[%s348_s0 + $0x10] sm:$0xff]  ;;  %v53_v5 = vld [vmem:[#allocation2 + $0x8] sm:$0x3]  ;;  %vm270_vm1 = vmmov 1   ;;  %v29_v6 = vld [vmem:[%s348_s0] sm:$0xff]  ;;  %vm271_vm3 = vmmov 0  }
  0x15   :  { %204 = vmatprep.subr.bf16.mxu1 %v269_v1  ;;  %200 = vmatprep.subr.bf16.mxu0 %v269_v1  ;;  %v52_v4 = vld [vmem:[#allocation2] sm:$0xff]  ;;  %vm202_vm2 = vmpackc.low %vm64_vm0, %vm270_vm1  ;;  %v272_v8 = vmov 0.0   ;;  %v33_v10 = vand.u32 127, %v32_v9  ;;  %vm54_vm4 = vcmask 80896   ;;  %v149_v17 = vld [vmem:[%s349_s1 + $0x8] sm:$0xff]  ;;  %vm154_vm8 = vcmask 261120  }
  0x16   :  { %38 = vperm.xlu0 %215, %v30_v2   ;;  %41 = vperm.xlu1 %216, %v31_v3   ;;  %v201_v7 = vpack.c.bf16 %v53_v5, %v52_v4  ;;  %v148_v21 = vld [vmem:[%s349_s1] sm:$0xff]  ;;  %v150_v22 = vld [vmem:[%s349_s1 + $0x10] sm:$0xff]  ;;  %s273_s9 = smov [#allocation5]  }
  0x17   :  { %194 = vmatprep.mubr.msk.f32.mxu1 %vm271_vm3, %v272_v8  ;;  %191 = vmatprep.mubr.msk.f32.mxu0 %vm271_vm3, %v272_v8  ;;  %s163_s10 = sshll.u32 %s273_s9, 4  ;;  %s164_s10 = int_to_ptr.vmem [resolvable:$true] %s163_s10 }
  0x18   :  { %205 = vmatpush3.bf16.msk.msra.mxu1 %vm202_vm2, %v201_v7  ;;  %203 = vmatpush3.bf16.msk.msra.mxu0 %vm202_vm2, %v201_v7  ;;  %s239_s11 = scalar_lea.vmem %s164_s10, 384  ;;  %p244_p9 = scmp.lt.s32.totalorder %s164_s10, %s164_s10 }
  0x19   :  { %p240_p8 = scmp.ne.s32.totalorder %s164_s10, %s239_s11  ;;  %p245_p10 = scmp.lt.s32.totalorder %s239_s11, %s239_s11 }
  0x1a   :  { %35 = vperm.xlu0 %215, %v29_v6  }
  0x1b   :  { %p246_p11 = por %p245_p10, %p244_p9 }
  0x1d   :  { %p247_p12 = pnand %p246_p11, %p240_p8 }
  0x95   :  { %v39_v11 = vpop.permute.xlu0 %38  ;;  %v42_v12 = vpop.permute.xlu1 %41 }
  0x96   :  { %vm44_vm5 = vcmp.eq.s32.totalorder %v39_v11, %v33_v10  ;;  %vm45_vm6 = vcmp.eq.s32.totalorder %v42_v12, %v33_v10 }
  0x97   :  { %v176_v13 = vsel %vm44_vm5, 1.0, %v272_v8  ;;  %v177_v14 = vsel %vm45_vm6, 1.0, %v272_v8 }
  0x98   :  { %195 = vmatmul.mubr.msk.f32.vlgmr.msra.gmra.mrb[0].mxu1 %vm54_vm4, %v176_v13 }
  0x99   :  { %v36_v15 = vpop.permute.xlu0 %35  ;;  %197 = vmatprep.mubr.msk.f32.mxu1 %vm271_vm3, %v272_v8 }
  0x9a   :  { %vm43_vm7 = vcmp.eq.s32.totalorder %v36_v15, %v33_v10 }
  0x9b   :  { %v175_v16 = vsel %vm43_vm7, 1.0, %v272_v8 }
  0x9c   :  { %192 = vmatmul.mubr.msk.f32.vlgmr.msra.gmra.mrb[0].mxu0 %vm54_vm4, %v175_v16  ;;  %198 = vmatmul.mubr.msk.f32.gmra.mrb[2].mxu1 %vm54_vm4, %v177_v14 }
 0x16b   :  { %v139_v18 = vpop.f32.mrb[0].mxu1 }
 0x16c   :  { %v152_v19 = vadd.f32 %v149_v17, %v139_v18  ;;  %v196_v20 = vpop.f32.mrb[1].mxu1 }
 0x16e   :  { %156 = vst.msk [vmem:[#allocation5 + $0x8] sm:$0xff] %vm154_vm8, %v152_v19 }
 0x16f   :  { %v134_v23 = vpop.f32.mrb[0].mxu0  ;;  %v144_v24 = vpop.f32.mrb[2].mxu1 }
 0x170   :  { %v151_v25 = vadd.f32 %v148_v21, %v134_v23  ;;  %v153_v26 = vadd.f32 %v150_v22, %v144_v24  ;;  %v193_v27 = vpop.f32.mrb[1].mxu0  ;;  %v199_v28 = vpop.f32.mrb[3].mxu1 }
 0x172   :  { %155 = vst.msk [vmem:[#allocation5] sm:$0xff] %vm154_vm8, %v151_v25  ;;  %157 = vst.msk [vmem:[#allocation5 + $0x10] sm:$0xff] %vm154_vm8, %v153_v26 }
 0x173   :  { %250 = shalt.err (!%p247_p12)
}
 0x174   :  { %s251_s13 = scalar_lea.hbm %s351_s3, 384 }
 0x175   :  { %p252_p13 = scmp.ne.s32.totalorder %s351_s3, %s251_s13  ;;  %p255_p0 = scmp.lt.u32.totalorder %s251_s13, %s351_s3 }
 0x177   :  { %p257_p1 = pnand %p255_p0, %p252_p13 }
 0x179   :  { %260 = shalt.err (!%p257_p1)
}
 0x17a   :  { %169 = dma.vmem_to_hbm [thread:$0]  %s164_s10, 384, %s351_s3, [#allocation4], %s266_s22, %s266_s22, %s267_s23  }
 0x17b   :  { %263 = dma.done.wait [#allocation4], 384  }
 0x17c   :  { %264 = vsyncadd [#allocation4], 4294966912 }
 0x17d   :  { %173 = vsyncpa [#allocation3], 1 }
 0x17e   :  { %174 = vsyncpa [#allocation4], 1 }

</bundles_post_ra>
